<compile_context>
chip_gen: v7x
topology: tpu7x:2x2x1
jax: 0.10.0
libtpu: 0.0.40
codegen_flags: <defaults>
</compile_context>

<pallas_src>
import math

import jax
import jax.numpy as jnp
from jax.experimental import pallas as pl
from jax.experimental.pallas import tpu as pltpu


# ---------------------------------------------------------------------------
# Packed parameter slab layout ((128 sublanes x 128 lanes) f32, 64 KiB).
# Every block starts on a multiple-of-8 sublane so static slices stay aligned:
#   rows   0: 8 , lanes 0:64 -> w1  (8, 64)    feature_net[0].weight^T
#   row    8    , lanes 0:64 -> b1  (64,)      feature_net[0].bias
#   rows  16:80 , lanes 0:32 -> w2  (64, 32)   feature_net[2].weight^T
#   row   80    , lanes 0:32 -> b2  (32,)      feature_net[2].bias
#   rows  88:120, lanes 0:3  -> wh  (32, 3)    [position | confidence | return] weights
#   row  120    , lanes 0:3  -> bh  (3,)       [position | confidence | return] biases
# ---------------------------------------------------------------------------
_SLAB_ROWS = 128
_SLAB_COLS = 128


def _model_kernel(x_ref, slab_ref, out_ref):
    """Full forward (feature net + fused 3-way head) for one batch tile."""
    x = x_ref[...]                                   # (TB, 8)

    w1 = slab_ref[0:8, 0:64]                         # (8, 64)
    b1 = slab_ref[8:9, 0:64]                         # (1, 64)
    w2 = slab_ref[16:80, 0:32]                       # (64, 32)
    b2 = slab_ref[80:81, 0:32]                       # (1, 32)
    wh = slab_ref[88:120, 0:3]                       # (32, 3)
    bh = slab_ref[120:121, 0:3]                      # (1, 3)

    # feature_net: Linear(8,64) -> ReLU -> Linear(64,32) -> ReLU
    h = jnp.dot(x, w1, preferred_element_type=jnp.float32) + b1
    h = jnp.maximum(h, 0.0)                          # (TB, 64)
    f = jnp.dot(h, w2, preferred_element_type=jnp.float32) + f32_zero_bias(b2)
    f = jnp.maximum(f, 0.0)                          # (TB, 32)

    # Fused heads: one (TB, 3) matmul; col 0 -> tanh, col 1 -> sigmoid, col 2 -> id.
    heads = jnp.dot(f, wh, preferred_element_type=jnp.float32) + bh    # (TB, 3)
    col = jax.lax.broadcasted_iota(jnp.int32, heads.shape, 1)
    out_ref[...] = jnp.where(
        col == 0, jnp.tanh(heads),
        jnp.where(col == 1, jax.nn.sigmoid(heads), heads))


def f32_zero_bias(b):
    # Trivial passthrough (kept so the kernel body reads uniformly).
    return b


def pack_params(w1, b1, w2, b2, wp, bp, wc, bc, wr, br):
    """Pack all weights/biases into one (128, 128) f32 slab (done once, host side)."""
    slab = jnp.zeros((_SLAB_ROWS, _SLAB_COLS), jnp.float32)
    slab = slab.at[0:8, 0:64].set(w1.astype(jnp.float32))
    slab = slab.at[8, 0:64].set(b1.reshape(64).astype(jnp.float32))
    slab = slab.at[16:80, 0:32].set(w2.astype(jnp.float32))
    slab = slab.at[80, 0:32].set(b2.reshape(32).astype(jnp.float32))
    wh = jnp.concatenate([wp, wc, wr], axis=1)        # (32, 3): pos | conf | ret
    bh = jnp.concatenate(
        [bp.reshape(1, 1), bc.reshape(1, 1), br.reshape(1, 1)], axis=1)  # (1, 3)
    slab = slab.at[88:120, 0:3].set(wh.astype(jnp.float32))
    slab = slab.at[120, 0:3].set(bh.reshape(3).astype(jnp.float32))
    return slab


def ultimate_realistic_forward(x, params, *, tb=512):
    """x: (B, 8) float32. Returns dict matching the PyTorch forward semantics."""
    x = x.astype(jnp.float32)
    B = x.shape[0]
    slab = params["slab"]

    # Pad batch to a multiple of 8 sublanes (and of the tile size, if gridded).
    Bp = ((B + 7) // 8) * 8
    TB = min(tb, Bp)
    Bp = pl.cdiv(Bp, TB) * TB
    if Bp != B:
        x = jnp.pad(x, ((0, Bp - B), (0, 0)))
    grid = (Bp // TB,)

    out = pl.pallas_call(
        _model_kernel,
        out_shape=jax.ShapeDtypeStruct((Bp, 3), jnp.float32),
        grid_spec=pltpu.PrefetchScalarGridSpec(
            num_scalar_prefetch=0,
            grid=grid,
            in_specs=[
                pl.BlockSpec((TB, 8), lambda i: (i, 0)),                 # batch tile
                pl.BlockSpec((_SLAB_ROWS, _SLAB_COLS), lambda i: (0, 0)),  # resident weights
            ],
            out_specs=pl.BlockSpec((TB, 3), lambda i: (i, 0)),           # lane-dense (TB,3)
        ),
        compiler_params=pltpu.CompilerParams(
            dimension_semantics=("parallel",)),
    )(x, slab)

    out = out[:B]
    return {
        "positions": out[:, 0],           # tanh head,    (B,)
        "confidence": out[:, 1],          # sigmoid head, (B,)
        "predicted_returns": out[:, 2],   # linear head,  (B,)
    }


def init_params(key):
    """Deterministic init, PyTorch-nn.Linear-style U(-1/sqrt(fan_in), 1/sqrt(fan_in)).

    Weights stored as [in_features, out_features]; packed into one VMEM slab.
    """
    def linear(key, fan_in, fan_out):
        kw, kb = jax.random.split(key)
        bound = 1.0 / math.sqrt(fan_in)
        w = jax.random.uniform(kw, (fan_in, fan_out), jnp.float32, -bound, bound)
        b = jax.random.uniform(kb, (1, fan_out), jnp.float32, -bound, bound)
        return w, b

    k1, k2, kp, kc, kr = jax.random.split(key, 5)
    w1, b1 = linear(k1, 8, 64)    # feature_net[0]
    w2, b2 = linear(k2, 64, 32)   # feature_net[2]
    wp, bp = linear(kp, 32, 1)    # position_head
    wc, bc = linear(kc, 32, 1)    # confidence_head
    wr, br = linear(kr, 32, 1)    # return_pred_head
    return {"slab": pack_params(w1, b1, w2, b2, wp, bp, wc, bc, wr, br)}


if __name__ == "__main__":
    key = jax.random.PRNGKey(0)
    k_params, k_x = jax.random.split(key)

    params = init_params(k_params)

    batch = 16  # config.batch_size
    x = jax.random.normal(k_x, (batch, 8), dtype=jnp.float32)

    out = ultimate_realistic_forward(x, params)
    jax.block_until_ready(out)

    assert out["positions"].shape == (batch,)
    assert out["confidence"].shape == (batch,)
    assert out["predicted_returns"].shape == (batch,)
    # Range sanity checks for tanh / sigmoid heads.
    assert bool(jnp.all(jnp.abs(out["positions"]) <= 1.0))
    assert bool(jnp.all((out["confidence"] >= 0.0) & (out["confidence"] <= 1.0)))

    print("KERNEL_OK")
</pallas_src>

<mosaic_0001>
module attributes {stable_mosaic.version = 11 : i64} {
  func.func @_model_kernel(%arg0: i32, %arg1: memref<16x8xf32, #tpu.memory_space<vmem>>, %arg2: memref<128x128xf32, #tpu.memory_space<vmem>>, %arg3: memref<16x3xf32, #tpu.memory_space<vmem>>) attributes {dimension_semantics = [#tpu.dimension_semantics<parallel>], iteration_bounds = array<i64: 1>, scalar_prefetch = 0 : i64, scratch_operands = 0 : i64, tpu.core_type = #tpu.core_type<tc>, window_params = [{transform_indices = @transform_0, window_bounds = array<i64: 16, 8>}, {pipeline_mode = #tpu.pipeline_mode<synchronous>, transform_indices = @transform_1, window_bounds = array<i64: 128, 128>}, {transform_indices = @transform_2, window_bounds = array<i64: 16, 3>}]} {
    %c0 = arith.constant 0 : index
    %c0_0 = arith.constant 0 : index
    %0 = vector.load %arg1[%c0, %c0_0] : memref<16x8xf32, #tpu.memory_space<vmem>>, vector<16x8xf32>
    %c0_1 = arith.constant 0 : index
    %c0_2 = arith.constant 0 : index
    %1 = vector.load %arg2[%c0_1, %c0_2] : memref<128x128xf32, #tpu.memory_space<vmem>>, vector<8x64xf32>
    %c8 = arith.constant 8 : index
    %c0_3 = arith.constant 0 : index
    %2 = vector.load %arg2[%c8, %c0_3] : memref<128x128xf32, #tpu.memory_space<vmem>>, vector<1x64xf32>
    %c16 = arith.constant 16 : index
    %c0_4 = arith.constant 0 : index
    %3 = vector.load %arg2[%c16, %c0_4] : memref<128x128xf32, #tpu.memory_space<vmem>>, vector<64x32xf32>
    %c80 = arith.constant 80 : index
    %c0_5 = arith.constant 0 : index
    %4 = vector.load %arg2[%c80, %c0_5] : memref<128x128xf32, #tpu.memory_space<vmem>>, vector<1x32xf32>
    %c88 = arith.constant 88 : index
    %c0_6 = arith.constant 0 : index
    %5 = vector.load %arg2[%c88, %c0_6] : memref<128x128xf32, #tpu.memory_space<vmem>>, vector<32x3xf32>
    %c120 = arith.constant 120 : index
    %c0_7 = arith.constant 0 : index
    %6 = vector.load %arg2[%c120, %c0_7] : memref<128x128xf32, #tpu.memory_space<vmem>>, vector<1x3xf32>
    %cst = arith.constant dense<0.000000e+00> : vector<16x64xf32>
    %7 = tpu.matmul %0, %1, %cst {dimension_numbers = #tpu.dot_dimension_numbers<[1], [0], [0], [1], [0, 0, 1, 1], [], []>} : vector<16x8xf32>, vector<8x64xf32>, vector<16x64xf32> -> vector<16x64xf32>
    %8 = vector.broadcast %2 : vector<1x64xf32> to vector<16x64xf32>
    %9 = arith.addf %7, %8 : vector<16x64xf32>
    %cst_8 = arith.constant 0.000000e+00 : f32
    %10 = vector.broadcast %cst_8 : f32 to vector<16x64xf32>
    %11 = arith.maximumf %9, %10 : vector<16x64xf32>
    %cst_9 = arith.constant dense<0.000000e+00> : vector<16x32xf32>
    %12 = tpu.matmul %11, %3, %cst_9 {dimension_numbers = #tpu.dot_dimension_numbers<[1], [0], [0], [1], [0, 0, 1, 1], [], []>} : vector<16x64xf32>, vector<64x32xf32>, vector<16x32xf32> -> vector<16x32xf32>
    %13 = vector.broadcast %4 : vector<1x32xf32> to vector<16x32xf32>
    %14 = arith.addf %12, %13 : vector<16x32xf32>
    %cst_10 = arith.constant 0.000000e+00 : f32
    %15 = vector.broadcast %cst_10 : f32 to vector<16x32xf32>
    %16 = arith.maximumf %14, %15 : vector<16x32xf32>
    %cst_11 = arith.constant dense<0.000000e+00> : vector<16x3xf32>
    %17 = tpu.matmul %16, %5, %cst_11 {dimension_numbers = #tpu.dot_dimension_numbers<[1], [0], [0], [1], [0, 0, 1, 1], [], []>} : vector<16x32xf32>, vector<32x3xf32>, vector<16x3xf32> -> vector<16x3xf32>
    %18 = vector.broadcast %6 : vector<1x3xf32> to vector<16x3xf32>
    %19 = arith.addf %17, %18 : vector<16x3xf32>
    %20 = tpu.iota {dimensions = array<i32: 1>} : vector<16x3xi32>
    %c0_i32 = arith.constant 0 : i32
    %21 = vector.broadcast %c0_i32 : i32 to vector<16x3xi32>
    %22 = arith.cmpi eq, %20, %21 : vector<16x3xi32>
    %23 = math.tanh %19 : vector<16x3xf32>
    %c1_i32 = arith.constant 1 : i32
    %24 = vector.broadcast %c1_i32 : i32 to vector<16x3xi32>
    %25 = arith.cmpi eq, %20, %24 : vector<16x3xi32>
    %26 = arith.negf %19 : vector<16x3xf32>
    %27 = math.exp %26 : vector<16x3xf32>
    %cst_12 = arith.constant 1.000000e+00 : f32
    %28 = vector.broadcast %cst_12 : f32 to vector<16x3xf32>
    %29 = arith.addf %28, %27 : vector<16x3xf32>
    %30 = arith.divf %28, %29 : vector<16x3xf32>
    %31 = arith.select %25, %30, %19 : vector<16x3xi1>, vector<16x3xf32>
    %32 = arith.select %22, %23, %31 : vector<16x3xi1>, vector<16x3xf32>
    %c0_13 = arith.constant 0 : index
    %c0_14 = arith.constant 0 : index
    %33 = vector.load %arg3[%c0_13, %c0_14] : memref<16x3xf32, #tpu.memory_space<vmem>>, vector<16x3xf32>
    tpu.vector_store %arg3[%c0_13, %c0_14], %32 {strides = array<i32>} : memref<16x3xf32, #tpu.memory_space<vmem>>, vector<16x3xf32>,
    return
  }
  func.func @transform_0(%arg0: i32) -> (i32, i32) {
    %c0_i32 = arith.constant 0 : i32
    %c0_i32_0 = arith.constant 0 : i32
    return %arg0, %c0_i32 : i32, i32
  }
  func.func @transform_1(%arg0: i32) -> (i32, i32) {
    %c0_i32 = arith.constant 0 : i32
    %c0_i32_0 = arith.constant 0 : i32
    %c0_i32_1 = arith.constant 0 : i32
    return %c0_i32, %c0_i32_0 : i32, i32
  }
  func.func @transform_2(%arg0: i32) -> (i32, i32) {
    %c0_i32 = arith.constant 0 : i32
    %c0_i32_0 = arith.constant 0 : i32
    return %arg0, %c0_i32 : i32, i32
  }
}

</mosaic_0001>

<bundles_post_ra>
// kernel: tpu_custom_call.1
= control target key start
LH: loop header
LB: loop body
LE: loop exit
PB: predicated region body
PF: predicated region fallthrough
CT: control target
= control target key end

     0   :  { %7 = vsyncpa [#allocation3], 0  ;;  %s463_s9 = smov [#allocation2]   ;;  %s505_s0 = inlined_call_operand.vmem [shape: f32[16,8], index: 0, kind: input, shape index: {}]   ;;  %s506_s1 = inlined_call_operand.hbm [shape: f32[128,128], index: 1, kind: input, shape index: {}]   ;;  %s507_s2 = inlined_call_operand.vmem [shape: f32[16,3], index: 2, kind: output, shape index: {}]  }
   0x1   :  { %s15_s10 = sshll.u32 %s463_s9, 4  ;;  %s439_s13 = scalar_lea.hbm %s506_s1, 2048  ;;  %s16_s10 = int_to_ptr.vmem [resolvable:$true] %s15_s10 }
   0x2   :  { %p440_p0 = scmp.ne.s32.totalorder %s506_s1, %s439_s13  ;;  %p443_p1 = scmp.lt.u32.totalorder %s439_s13, %s506_s1 }
   0x4   :  { %p445_p2 = pnand %p443_p1, %p440_p0 }
   0x6   :  { %448 = shalt.err (!%p445_p2)
}
   0x7   :  { %s449_s18 = scalar_lea.vmem %s16_s10, 2048  ;;  %p454_p4 = scmp.lt.s32.totalorder %s16_s10, %s16_s10 }
   0x8   :  { %p450_p3 = scmp.ne.s32.totalorder %s16_s10, %s449_s18  ;;  %p455_p5 = scmp.lt.s32.totalorder %s449_s18, %s449_s18 }
   0xa   :  { %p456_p6 = por %p455_p5, %p454_p4 }
   0xc   :  { %p457_p7 = pnand %p456_p6, %p450_p3 }
   0xe   :  { %460 = shalt.err (!%p457_p7)
}
   0xf   :  { %s464_s19 = smov 128   ;;  %s465_s20 = smov 8  }
  0x10   :  { %21 = dma.hbm_to_vmem [thread:$0]  %s506_s1, 2048, %s16_s10, [#allocation3], %s464_s19, %s464_s19, %s465_s20  }
  0x11   :  { %461 = dma.done.wait [#allocation3], 2048  }
  0x12   :  { %462 = vsyncadd [#allocation3], 4294965248  ;;  %vm47_vm0 = vcmask 64512   ;;  %v27_v0 = vld [vmem:[#allocation2] sm:$0xff]  ;;  %v26_v2 = vld [vmem:[%s505_s0 + $0x8] sm:$0xff]  ;;  %vm135_vm1 = vcmask 523264   ;;  %v305_v46 = vlaneseq }
  0x13   :  { %v25_v1 = vld [vmem:[%s505_s0] sm:$0xff]  ;;  %365 = vmatprep.subr.mxu0 %v27_v0  ;;  %v29_v3 = vld [vmem:[#allocation2 + $0x10] sm:$0xff]  ;;  %v30_v4 = vld [vmem:[#allocation2 + $0x18] sm:$0xff]  ;;  %vm223_vm2 = vcmask 261120   ;;  %vm327_vm5 = vcmask 23552  }
  0x14   :  { %367 = vmatprep.mubr.msk.f32.mxu0 %vm47_vm0, %v25_v1  ;;  %v31_v5 = vld [vmem:[#allocation2 + $0x20] sm:$0xff]  ;;  %366 = vmatpush3.msra.mxu0 %v27_v0  ;;  %v400_v6 = vpack.c.bf16 %v30_v4, %v29_v3  ;;  %v32_v7 = vld [vmem:[#allocation2 + $0x28] sm:$0xff]  ;;  %v33_v9 = vld [vmem:[#allocation2 + $0x30] sm:$0xff]  ;;  %v306_v47 = vand.u32 127, %v305_v46 }
  0x15   :  { %368 = vmatmul.mubr.msk.f32.vlgmr.msra.gmra.mrb[0].mxu0 %vm47_vm0, %v26_v2  ;;  %v404_v8 = vpack.c.bf16 %v32_v7, %v31_v5  ;;  %v34_v10 = vld [vmem:[#allocation2 + $0x38] sm:$0xff]  ;;  %v35_v12 = vld [vmem:[#allocation2 + $0x40] sm:$0xff]  ;;  %v36_v13 = vld [vmem:[#allocation2 + $0x48] sm:$0xff] }
  0x16   :  { %401 = vmatprep.subr.bf16.mxu1 %v400_v6  ;;  %v408_v11 = vpack.c.bf16 %v34_v10, %v33_v9  ;;  %v412_v14 = vpack.c.bf16 %v36_v13, %v35_v12  ;;  %v38_v15 = vld [vmem:[#allocation2 + $0x58] sm:$0xff]  ;;  %v39_v16 = vld [vmem:[#allocation2 + $0x60] sm:$0xff]  ;;  %v335_v18 = vld [vmem:[#allocation2 + $0x8] ss:$0 sm:$0xff]  ;;  %vm310_vm3 = vcmp.eq.s32.totalorder %v306_v47, 1  ;;  %vm307_vm4 = vcmp.eq.s32.totalorder %v306_v47, 0 }
  0x17   :  { %403 = vmatpush3.bf16.msra.mxu1 %v400_v6  ;;  %v416_v17 = vpack.c.bf16 %v39_v16, %v38_v15  ;;  %v40_v25 = vld [vmem:[#allocation2 + $0x68] sm:$0xff]  ;;  %v41_v26 = vld [vmem:[#allocation2 + $0x70] sm:$0xff]  ;;  %v341_v35 = vld [vmem:[#allocation2 + $0x78] ss:$0 sm:$0xff] }
  0x18   :  { %405 = vmatprep.subr.bf16.mxu1 %v404_v8  ;;  %v420_v27 = vpack.c.bf16 %v41_v26, %v40_v25  ;;  %v338_v28 = vld [vmem:[#allocation2 + $0x50] ss:$0 sm:$0xff] }
  0x19   :  { %417 = vmatprep.subr.bf16.mxu0 %v416_v17 }
  0x1a   :  { %419 = vmatpush3.bf16.msra.mxu0 %v416_v17 }
  0x1b   :  { %407 = vmatpush3.bf16.msra.mxu1 %v404_v8  ;;  %421 = vmatprep.subr.bf16.mxu0 %v420_v27 }
  0x1c   :  { %409 = vmatprep.subr.bf16.mxu1 %v408_v11 }
  0x1e   :  { %423 = vmatpush3.bf16.msra.mxu0 %v420_v27 }
  0x1f   :  { %411 = vmatpush3.bf16.msra.mxu1 %v408_v11 }
  0x20   :  { %413 = vmatprep.subr.bf16.mxu1 %v412_v14 }
  0x23   :  { %415 = vmatpush3.bf16.msra.mxu1 %v412_v14 }
  0xe8   :  { %v369_v19 = vpop.f32.mrb[0].mxu0 }
  0xe9   :  { %v126_v20 = vadd.f32 %v369_v19, %v335_v18  ;;  %v120_v21 = vpop.f32.mrb[1].mxu0 }
  0xea   :  { %v121_v22 = vadd.f32 %v335_v18, %v120_v21 }
  0xeb   :  { %v130_v24 = vmax.f32 %v126_v20, 0.0 }
  0xec   :  { %v129_v23 = vmax.f32 %v121_v22, 0.0 }
  0xee   :  { %386 = vmatprep.mubr.msk.f32.mxu1 %vm135_vm1, %v129_v23 }
  0xef   :  { %387 = vmatmul.mubr.msk.f32.vlgmr.msra.gmra.mrb[0].mxu1 %vm135_vm1, %v130_v24 }
 0x1c2   :  { %v388_v29 = vpop.f32.mrb[0].mxu1 }
 0x1c3   :  { %v214_v30 = vadd.f32 %v388_v29, %v338_v28  ;;  %v208_v31 = vpop.f32.mrb[1].mxu1 }
 0x1c4   :  { %v209_v32 = vadd.f32 %v338_v28, %v208_v31 }
 0x1c5   :  { %v218_v34 = vmax.f32 %v214_v30, 0.0 }
 0x1c6   :  { %v217_v33 = vmax.f32 %v209_v32, 0.0 }
 0x1c8   :  { %397 = vmatprep.mubr.msk.f32.mxu0 %vm223_vm2, %v217_v33 }
 0x1c9   :  { %398 = vmatmul.mubr.msk.f32.vlgmr.msra.gmra.mrb[2].mxu0 %vm223_vm2, %v218_v34 }
 0x29c   :  { %v399_v36 = vpop.f32.mrb[2].mxu0 }
 0x29d   :  { %v302_v37 = vadd.f32 %v399_v36, %v341_v35  ;;  %v296_v38 = vpop.f32.mrb[3].mxu0 }
 0x29e   :  { %v297_v39 = vadd.f32 %v341_v35, %v296_v38 }
 0x29f   :  { %v345_v40 = vmul.f32 -1.442695, %v302_v37 }
 0x2a0   :  { %v344_v41 = vmul.f32 -1.442695, %v297_v39 }
 0x2a1   :  { %427 = vpow2.f32 %v345_v40 }
 0x2a2   :  { %429 = vpow2.f32 %v344_v41 }
 0x2a3   :  { %431 = vtanh.f32 %v302_v37 }
 0x2ab   :  { %v428_v42 = vpop.eup %427 }
 0x2ac   :  { %v430_v43 = vpop.eup %429  ;;  %v318_v44 = vadd.f32 1.0, %v428_v42 }
 0x2ad   :  { %v317_v45 = vadd.f32 1.0, %v430_v43  ;;  %v432_v48 = vpop.eup %431 }
 0x2ae   :  { %433 = vrcp.f32 %v318_v44 }
 0x2af   :  { %435 = vrcp.f32 %v317_v45 }
 0x2b0   :  { %437 = vtanh.f32 %v297_v39 }
 0x2b8   :  { %v434_v49 = vpop.eup %433 }
 0x2b9   :  { %v436_v50 = vpop.eup %435  ;;  %v324_v51 = vsel %vm310_vm3, %v434_v49, %v302_v37 }
 0x2ba   :  { %v438_v52 = vpop.eup %437  ;;  %v326_v53 = vsel %vm307_vm4, %v432_v48, %v324_v51  ;;  %v323_v54 = vsel %vm310_vm3, %v436_v50, %v297_v39 }
 0x2bb   :  { %329 = vst.msk [vmem:[%s507_s2 + $0x8] sm:$0xff] %vm327_vm5, %v326_v53  ;;  %v325_v55 = vsel %vm307_vm4, %v438_v52, %v323_v54 }
 0x2bc   :  { %328 = vst.msk [vmem:[%s507_s2] sm:$0xff] %vm327_vm5, %v325_v55 }
 0x2bd   :  { %334 = vsyncpa [#allocation3], 1 }

</bundles_post_ra>
